<compile_context>
chip_gen: v7x
topology: tpu7x:2x2x1
jax: 0.10.0
libtpu: 0.0.40
codegen_flags: <defaults>
</compile_context>

<pallas_src>
import jax
import jax.numpy as jnp
from jax.experimental import pallas as pl
from jax.experimental.pallas import tpu as pltpu


def _round_up(x, m):
    return (x + m - 1) // m * m


def mlp_poly_kernel(i_ref, j_ref, apt_ref, w1_ref, b1_ref, w2_ref, b2_ref,
                    w3_ref, b3_ref, o_ref):
    """One batch tile of TB pairs, batch along the lane axis.

    Shapes (all 2-D):
      i_ref, j_ref : (1, TB)   int32  node indices for this tile
      apt_ref      : (S*N, N)  f32    row s*N+n holds A^(s+1)[:, n]  (A_s^T stacked)
      w1_ref       : (H, S*N)  f32    fc1 weight (torch (out, in) layout)
      b1_ref       : (H, 1)    f32
      w2_ref       : (H, H)    f32    fc2 weight
      b2_ref       : (H, 1)    f32
      w3_ref       : (H, 1)    f32    fc3 weight (as a column)
      b3_ref       : (1, 1)    f32
      o_ref        : (1, TB)   f32    sigmoid(logit), lane-dense
    """
    n_nodes = apt_ref.shape[1]
    tb = i_ref.shape[1]
    cdt = w1_ref.dtype            # MXU operand dtype (f32 here)

    # One-hot encode BOTH index sets in a single (N, 2*TB) slab (sublane = node id).
    ids = jnp.concatenate([i_ref[...], j_ref[...]], axis=1)               # (1, 2*TB)
    node_ids = jax.lax.broadcasted_iota(jnp.int32, (n_nodes, 2 * tb), 0)
    oh = (node_ids == ids).astype(cdt)                                    # (N, 2*TB)

    # Single fused in-kernel gather of all S power-rows for both i and j:
    #   g[s*N + n, r]        = A^(s+1)[i_r, n]   for r <  TB
    #   g[s*N + n, TB + r]   = A^(s+1)[j_r, n]   for r <  TB
    g = jnp.dot(apt_ref[...], oh, preferred_element_type=jnp.float32)     # (S*N, 2*TB)
    gi = g[:, :tb]
    gj = g[:, tb:]

    # Elementwise "dot product" features, consumed immediately by fc1.
    x = (gi * gj).astype(cdt)                                             # (S*N, TB)

    # fc1 + ReLU
    h1 = jnp.dot(w1_ref[...], x, preferred_element_type=jnp.float32) + b1_ref[...]
    h1 = jnp.maximum(h1, 0.0).astype(cdt)                                 # (H, TB)

    # fc2 + ReLU
    h2 = jnp.dot(w2_ref[...], h1, preferred_element_type=jnp.float32) + b2_ref[...]
    h2 = jnp.maximum(h2, 0.0)                                             # (H, TB) f32

    # fc3 as VPU multiply + sublane reduction -> lane-dense (1, TB) logits.
    z = jnp.sum(h2 * w3_ref[...].astype(jnp.float32), axis=0, keepdims=True)
    z = z + b3_ref[...]
    o_ref[...] = jax.nn.sigmoid(z)                                        # (1, TB)


def _xla_forward(i_idx, j_idx, A_powers_T, W1, b1, W2, b2, W3, b3):
    """Plain-XLA small-batch fast path (identical math)."""
    ap = A_powers_T.T                                       # (N, S*N)
    feats = ap[i_idx] * ap[j_idx]                           # (B, S*N)
    h1 = jnp.maximum(feats @ W1.T + b1, 0.0)
    h2 = jnp.maximum(h1 @ W2.T + b2, 0.0)
    z = h2 @ W3.T + b3
    return jax.nn.sigmoid(z).reshape(-1)


def mlp_polynomial_lp_pallas(i_idx, j_idx, A_powers_T, W1, b1, W2, b2, W3, b3,
                             *, block_b=4096, min_pallas_batch=1024,
                             force_pallas=False):
    """Forward pass. Weights in torch layout: W1 (H, S*N), W2 (H, H), W3 (1, H).

    A_powers_T is the stacked transposed powers: row s*N+n = A^(s+1)[:, n].
    """
    B = int(i_idx.shape[0])

    # Small-B fast path: launch + 128-lane padding would dominate the math.
    if not force_pallas and B < min_pallas_batch:
        return _xla_forward(i_idx, j_idx, A_powers_T, W1, b1, W2, b2, W3, b3)

    F, n_nodes = A_powers_T.shape
    H = W1.shape[0]

    # Batch tile: large (amortize per-step overhead), lane-aligned, v7x-safe cap.
    block_b = min(int(block_b), 8192)
    tb = min(block_b, _round_up(max(B, 1), 128))
    tb = _round_up(tb, 128)
    b_pad = _round_up(max(B, 1), tb)
    n_tiles = b_pad // tb
    # v7x dual-TC: ensure >= 2 grid steps when there is enough work to split.
    if n_tiles == 1 and tb >= 256:
        tb = _round_up(tb // 2, 128)
        b_pad = _round_up(max(B, 1), tb)
        n_tiles = b_pad // tb

    # Pad indices with 0 (a valid node); padded lanes are sliced off below.
    ii = jnp.zeros((1, b_pad), jnp.int32).at[0, :B].set(i_idx.astype(jnp.int32))
    jj = jnp.zeros((1, b_pad), jnp.int32).at[0, :B].set(j_idx.astype(jnp.int32))

    b1c = b1.reshape(H, 1).astype(jnp.float32)
    b2c = b2.reshape(H, 1).astype(jnp.float32)
    b3c = b3.reshape(1, 1).astype(jnp.float32)
    w3c = W3.reshape(H, 1)

    const = lambda shape: pl.BlockSpec(shape, lambda t: (0, 0))
    lane_tiled = pl.BlockSpec((1, tb), lambda t: (0, t))

    out = pl.pallas_call(
        mlp_poly_kernel,
        out_shape=jax.ShapeDtypeStruct((1, b_pad), jnp.float32),
        grid=(n_tiles,),
        in_specs=[
            lane_tiled,                  # i indices
            lane_tiled,                  # j indices
            const((F, n_nodes)),         # stacked transposed A powers (VMEM resident)
            const((H, F)),               # W1
            const((H, 1)),               # b1
            const((H, H)),               # W2
            const((H, 1)),               # b2
            const((H, 1)),               # W3 (as column)
            const((1, 1)),               # b3
        ],
        out_specs=lane_tiled,
        compiler_params=pltpu.CompilerParams(
            dimension_semantics=("parallel",),
            vmem_limit_bytes=32 * 1024 * 1024),
    )(ii, jj, A_powers_T, W1, b1c, W2, b2c, w3c, b3c)

    return out.reshape(-1)[:B]


def reference_forward(i_idx, j_idx, A_powers, W1, b1, W2, b2, W3, b3):
    feats = jnp.concatenate([P[i_idx] * P[j_idx] for P in A_powers], axis=1)
    h1 = jnp.maximum(feats @ W1.T + b1, 0.0)
    h2 = jnp.maximum(h1 @ W2.T + b2, 0.0)
    z = h2 @ W3.T + b3
    return jax.nn.sigmoid(z).reshape(-1)


if __name__ == "__main__":
    key = jax.random.PRNGKey(0)

    # Problem sizes consistent with the module's __init__:
    N = 16            # number of nodes == input_size == A.shape[0]
    S = 3             # num_series
    H = 32            # hidden_channels
    B = 8             # number of (i, j) query pairs (small test)

    k_a, k_w1, k_b1, k_w2, k_b2, k_w3, k_b3, k_i, k_j = jax.random.split(key, 9)

    # Deterministic synthetic adjacency-like matrix A (dense).
    A = jax.random.uniform(k_a, (N, N), dtype=jnp.float32) / N

    # A_powers = [A, A@A, ..., A^S]
    A_powers = [A]
    for _ in range(1, S):
        A_powers.append(A_powers[-1] @ A)

    # Deterministic parameter init (PyTorch Linear-style uniform bounds).
    def lin_init(kw, kb, fan_in, fan_out):
        bound = 1.0 / jnp.sqrt(fan_in)
        w = jax.random.uniform(kw, (fan_out, fan_in), jnp.float32, -bound, bound)
        b = jax.random.uniform(kb, (fan_out,), jnp.float32, -bound, bound)
        return w, b

    W1, B1 = lin_init(k_w1, k_b1, N * S, H)    # fc1: (H, S*N)
    W2, B2 = lin_init(k_w2, k_b2, H, H)        # fc2: (H, H)
    W3, B3 = lin_init(k_w3, k_b3, H, 1)        # fc3: (1, H)

    # Stacked transposed powers for the in-kernel gather: row s*N+n = A^(s+1)[:, n].
    A_powers_T = jnp.concatenate([P.T for P in A_powers], axis=0)   # (S*N, N)

    # --- Pallas path, small B (forced; single 128-lane tile) ---
    i_idx = jax.random.randint(k_i, (B,), 0, N)
    j_idx = jax.random.randint(k_j, (B,), 0, N)

    out = mlp_polynomial_lp_pallas(i_idx, j_idx, A_powers_T, W1, B1, W2, B2, W3, B3,
                                   force_pallas=True)
    out = jax.block_until_ready(out)
    ref = reference_forward(i_idx, j_idx, A_powers, W1, B1, W2, B2, W3, B3)
    assert out.shape == (B,)
    assert jnp.allclose(out, ref, atol=1e-5, rtol=1e-5), (out, ref)

    # --- Pallas path, B with remainder (exercises the >=2-tile split + padding) ---
    B2n = 300
    k_i2, k_j2 = jax.random.split(jax.random.PRNGKey(1))
    i2 = jax.random.randint(k_i2, (B2n,), 0, N)
    j2 = jax.random.randint(k_j2, (B2n,), 0, N)
    out2 = mlp_polynomial_lp_pallas(i2, j2, A_powers_T, W1, B1, W2, B2, W3, B3,
                                    force_pallas=True)
    out2 = jax.block_until_ready(out2)
    ref2 = reference_forward(i2, j2, A_powers, W1, B1, W2, B2, W3, B3)
    assert out2.shape == (B2n,)
    assert jnp.allclose(out2, ref2, atol=1e-5, rtol=1e-5)

    # --- Small-B XLA fast path (default dispatch) ---
    out_fast = jax.block_until_ready(
        mlp_polynomial_lp_pallas(i_idx, j_idx, A_powers_T, W1, B1, W2, B2, W3, B3))
    assert jnp.allclose(out_fast, ref, atol=1e-5, rtol=1e-5)

    print("KERNEL_OK")
</pallas_src>

<mosaic_0001>
module attributes {stable_mosaic.version = 11 : i64} {
  func.func @mlp_poly_kernel(%arg0: i32, %arg1: memref<1x128xi32, #tpu.memory_space<vmem>>, %arg2: memref<1x128xi32, #tpu.memory_space<vmem>>, %arg3: memref<48x16xf32, #tpu.memory_space<vmem>>, %arg4: memref<32x48xf32, #tpu.memory_space<vmem>>, %arg5: memref<32x1xf32, #tpu.memory_space<vmem>>, %arg6: memref<32x32xf32, #tpu.memory_space<vmem>>, %arg7: memref<32x1xf32, #tpu.memory_space<vmem>>, %arg8: memref<32x1xf32, #tpu.memory_space<vmem>>, %arg9: memref<1x1xf32, #tpu.memory_space<vmem>>, %arg10: memref<1x128xf32, #tpu.memory_space<vmem>>) attributes {dimension_semantics = [#tpu.dimension_semantics<parallel>], iteration_bounds = array<i64: 1>, scalar_prefetch = 0 : i64, scratch_operands = 0 : i64, tpu.core_type = #tpu.core_type<tc>, window_params = [{transform_indices = @transform_0, window_bounds = array<i64: 1, 128>}, {transform_indices = @transform_1, window_bounds = array<i64: 1, 128>}, {pipeline_mode = #tpu.pipeline_mode<synchronous>, transform_indices = @transform_2, window_bounds = array<i64: 48, 16>}, {pipeline_mode = #tpu.pipeline_mode<synchronous>, transform_indices = @transform_3, window_bounds = array<i64: 32, 48>}, {pipeline_mode = #tpu.pipeline_mode<synchronous>, transform_indices = @transform_4, window_bounds = array<i64: 32, 1>}, {pipeline_mode = #tpu.pipeline_mode<synchronous>, transform_indices = @transform_5, window_bounds = array<i64: 32, 32>}, {pipeline_mode = #tpu.pipeline_mode<synchronous>, transform_indices = @transform_6, window_bounds = array<i64: 32, 1>}, {pipeline_mode = #tpu.pipeline_mode<synchronous>, transform_indices = @transform_7, window_bounds = array<i64: 32, 1>}, {pipeline_mode = #tpu.pipeline_mode<synchronous>, transform_indices = @transform_8, window_bounds = array<i64: 1, 1>}, {transform_indices = @transform_9, window_bounds = array<i64: 1, 128>}]} {
    %c0 = arith.constant 0 : index
    %c0_0 = arith.constant 0 : index
    %0 = vector.load %arg1[%c0, %c0_0] : memref<1x128xi32, #tpu.memory_space<vmem>>, vector<1x128xi32>
    %c0_1 = arith.constant 0 : index
    %c0_2 = arith.constant 0 : index
    %1 = vector.load %arg2[%c0_1, %c0_2] : memref<1x128xi32, #tpu.memory_space<vmem>>, vector<1x128xi32>
    %2 = tpu.concatenate %0, %1 in 1 : vector<1x128xi32>, vector<1x128xi32> -> vector<1x256xi32>
    %3 = tpu.iota {dimensions = array<i32: 0>} : vector<16x256xi32>
    %4 = vector.broadcast %2 : vector<1x256xi32> to vector<16x256xi32>
    %5 = arith.cmpi eq, %3, %4 : vector<16x256xi32>
    %6 = arith.extui %5 : vector<16x256xi1> to vector<16x256xi32>
    %7 = arith.sitofp %6 : vector<16x256xi32> to vector<16x256xf32>
    %c0_3 = arith.constant 0 : index
    %c0_4 = arith.constant 0 : index
    %8 = vector.load %arg3[%c0_3, %c0_4] : memref<48x16xf32, #tpu.memory_space<vmem>>, vector<48x16xf32>
    %cst = arith.constant dense<0.000000e+00> : vector<48x256xf32>
    %9 = tpu.matmul %8, %7, %cst {dimension_numbers = #tpu.dot_dimension_numbers<[1], [0], [0], [1], [0, 0, 1, 1], [], []>} : vector<48x16xf32>, vector<16x256xf32>, vector<48x256xf32> -> vector<48x256xf32>
    %10 = vector.extract_strided_slice %9 {offsets = [0, 0], sizes = [48, 128], strides = [1, 1]} : vector<48x256xf32> to vector<48x128xf32>
    %11 = vector.extract_strided_slice %9 {offsets = [0, 128], sizes = [48, 128], strides = [1, 1]} : vector<48x256xf32> to vector<48x128xf32>
    %12 = arith.mulf %10, %11 : vector<48x128xf32>
    %c0_5 = arith.constant 0 : index
    %c0_6 = arith.constant 0 : index
    %13 = vector.load %arg4[%c0_5, %c0_6] : memref<32x48xf32, #tpu.memory_space<vmem>>, vector<32x48xf32>
    %cst_7 = arith.constant dense<0.000000e+00> : vector<32x128xf32>
    %14 = tpu.matmul %13, %12, %cst_7 {dimension_numbers = #tpu.dot_dimension_numbers<[1], [0], [0], [1], [0, 0, 1, 1], [], []>} : vector<32x48xf32>, vector<48x128xf32>, vector<32x128xf32> -> vector<32x128xf32>
    %c0_8 = arith.constant 0 : index
    %c0_9 = arith.constant 0 : index
    %15 = vector.load %arg5[%c0_8, %c0_9] : memref<32x1xf32, #tpu.memory_space<vmem>>, vector<32x1xf32>
    %16 = vector.broadcast %15 : vector<32x1xf32> to vector<32x128xf32>
    %17 = arith.addf %14, %16 : vector<32x128xf32>
    %cst_10 = arith.constant 0.000000e+00 : f32
    %18 = vector.broadcast %cst_10 : f32 to vector<32x128xf32>
    %19 = arith.maximumf %17, %18 : vector<32x128xf32>
    %c0_11 = arith.constant 0 : index
    %c0_12 = arith.constant 0 : index
    %20 = vector.load %arg6[%c0_11, %c0_12] : memref<32x32xf32, #tpu.memory_space<vmem>>, vector<32x32xf32>
    %cst_13 = arith.constant dense<0.000000e+00> : vector<32x128xf32>
    %21 = tpu.matmul %20, %19, %cst_13 {dimension_numbers = #tpu.dot_dimension_numbers<[1], [0], [0], [1], [0, 0, 1, 1], [], []>} : vector<32x32xf32>, vector<32x128xf32>, vector<32x128xf32> -> vector<32x128xf32>
    %c0_14 = arith.constant 0 : index
    %c0_15 = arith.constant 0 : index
    %22 = vector.load %arg7[%c0_14, %c0_15] : memref<32x1xf32, #tpu.memory_space<vmem>>, vector<32x1xf32>
    %23 = vector.broadcast %22 : vector<32x1xf32> to vector<32x128xf32>
    %24 = arith.addf %21, %23 : vector<32x128xf32>
    %cst_16 = arith.constant 0.000000e+00 : f32
    %25 = vector.broadcast %cst_16 : f32 to vector<32x128xf32>
    %26 = arith.maximumf %24, %25 : vector<32x128xf32>
    %c0_17 = arith.constant 0 : index
    %c0_18 = arith.constant 0 : index
    %27 = vector.load %arg8[%c0_17, %c0_18] : memref<32x1xf32, #tpu.memory_space<vmem>>, vector<32x1xf32>
    %28 = vector.broadcast %27 : vector<32x1xf32> to vector<32x128xf32>
    %29 = arith.mulf %26, %28 : vector<32x128xf32>
    %cst_19 = arith.constant dense<0.000000e+00> : vector<128xf32>
    %30 = vector.multi_reduction <add>, %29, %cst_19 [0] : vector<32x128xf32> to vector<128xf32>
    %31 = vector.shape_cast %30 : vector<128xf32> to vector<1x128xf32>
    %c0_20 = arith.constant 0 : index
    %c0_21 = arith.constant 0 : index
    %32 = vector.load %arg9[%c0_20, %c0_21] : memref<1x1xf32, #tpu.memory_space<vmem>>, vector<1x1xf32>
    %33 = vector.broadcast %32 : vector<1x1xf32> to vector<1x128xf32>
    %34 = arith.addf %31, %33 : vector<1x128xf32>
    %35 = arith.negf %34 : vector<1x128xf32>
    %36 = math.exp %35 : vector<1x128xf32>
    %cst_22 = arith.constant 1.000000e+00 : f32
    %37 = vector.broadcast %cst_22 : f32 to vector<1x128xf32>
    %38 = arith.addf %37, %36 : vector<1x128xf32>
    %39 = arith.divf %37, %38 : vector<1x128xf32>
    %c0_23 = arith.constant 0 : index
    %c0_24 = arith.constant 0 : index
    %40 = vector.load %arg10[%c0_23, %c0_24] : memref<1x128xf32, #tpu.memory_space<vmem>>, vector<1x128xf32>
    tpu.vector_store %arg10[%c0_23, %c0_24], %39 {strides = array<i32>} : memref<1x128xf32, #tpu.memory_space<vmem>>, vector<1x128xf32>,
    return
  }
  func.func @transform_0(%arg0: i32) -> (i32, i32) {
    %c0_i32 = arith.constant 0 : i32
    %c0_i32_0 = arith.constant 0 : i32
    return %c0_i32, %arg0 : i32, i32
  }
  func.func @transform_1(%arg0: i32) -> (i32, i32) {
    %c0_i32 = arith.constant 0 : i32
    %c0_i32_0 = arith.constant 0 : i32
    return %c0_i32, %arg0 : i32, i32
  }
  func.func @transform_2(%arg0: i32) -> (i32, i32) {
    %c0_i32 = arith.constant 0 : i32
    %c0_i32_0 = arith.constant 0 : i32
    %c0_i32_1 = arith.constant 0 : i32
    return %c0_i32, %c0_i32_0 : i32, i32
  }
  func.func @transform_3(%arg0: i32) -> (i32, i32) {
    %c0_i32 = arith.constant 0 : i32
    %c0_i32_0 = arith.constant 0 : i32
    %c0_i32_1 = arith.constant 0 : i32
    return %c0_i32, %c0_i32_0 : i32, i32
  }
  func.func @transform_4(%arg0: i32) -> (i32, i32) {
    %c0_i32 = arith.constant 0 : i32
    %c0_i32_0 = arith.constant 0 : i32
    %c0_i32_1 = arith.constant 0 : i32
    return %c0_i32, %c0_i32_0 : i32, i32
  }
  func.func @transform_5(%arg0: i32) -> (i32, i32) {
    %c0_i32 = arith.constant 0 : i32
    %c0_i32_0 = arith.constant 0 : i32
    %c0_i32_1 = arith.constant 0 : i32
    return %c0_i32, %c0_i32_0 : i32, i32
  }
  func.func @transform_6(%arg0: i32) -> (i32, i32) {
    %c0_i32 = arith.constant 0 : i32
    %c0_i32_0 = arith.constant 0 : i32
    %c0_i32_1 = arith.constant 0 : i32
    return %c0_i32, %c0_i32_0 : i32, i32
  }
  func.func @transform_7(%arg0: i32) -> (i32, i32) {
    %c0_i32 = arith.constant 0 : i32
    %c0_i32_0 = arith.constant 0 : i32
    %c0_i32_1 = arith.constant 0 : i32
    return %c0_i32, %c0_i32_0 : i32, i32
  }
  func.func @transform_8(%arg0: i32) -> (i32, i32) {
    %c0_i32 = arith.constant 0 : i32
    %c0_i32_0 = arith.constant 0 : i32
    %c0_i32_1 = arith.constant 0 : i32
    return %c0_i32, %c0_i32_0 : i32, i32
  }
  func.func @transform_9(%arg0: i32) -> (i32, i32) {
    %c0_i32 = arith.constant 0 : i32
    %c0_i32_0 = arith.constant 0 : i32
    return %c0_i32, %arg0 : i32, i32
  }
}

</mosaic_0001>

<bundles_post_ra>
// kernel: tpu_custom_call.1
= control target key start
LH: loop header
LB: loop body
LE: loop exit
PB: predicated region body
PF: predicated region fallthrough
CT: control target
= control target key end

     0   :  { %s827_s0 = inlined_call_operand.vmem [shape: s32[1,128], index: 0, kind: input, shape index: {}]   ;;  %s828_s1 = inlined_call_operand.vmem [shape: s32[1,128], index: 1, kind: input, shape index: {}]   ;;  %s829_s2 = inlined_call_operand.vmem [shape: f32[48,16], index: 2, kind: input, shape index: {}]   ;;  %s830_s3 = inlined_call_operand.vmem [shape: f32[32,48], index: 3, kind: input, shape index: {}]   ;;  %s831_s4 = inlined_call_operand.vmem [shape: f32[32,1], index: 4, kind: input, shape index: {}]   ;;  %s832_s5 = inlined_call_operand.vmem [shape: f32[32,32], index: 5, kind: input, shape index: {}]   ;;  %s833_s6 = inlined_call_operand.vmem [shape: f32[32,1], index: 6, kind: input, shape index: {}]   ;;  %s834_s7 = inlined_call_operand.vmem [shape: f32[32,1], index: 7, kind: input, shape index: {}]   ;;  %s835_s8 = inlined_call_operand.<no memory space> [shape: f32[1,1], index: 8, kind: input, shape index: {}]   ;;  %s836_s9 = inlined_call_operand.hbm [shape: f32[1,128], index: 9, kind: output, shape index: {}]  }
   0x1   :  { %v14_v0 = vstv %s835_s8 }
   0x2   :  { %15 = vst [vmem:[#allocation2] sm:$0x1] %v14_v0 }
   0x3   :  { %v37_v1 = vlaneseq  ;;  %v522_v2 = vld [vmem:[%s828_s1] ss:$0 sm:$0xff]  ;;  %v654_v5 = vmov 0.0  }
   0x4   :  { %v521_v4 = vld [vmem:[%s827_s0] ss:$0 sm:$0xff]  ;;  %149 = vmatprep.mubr.f32.mxu0 %v654_v5 }
   0x5   :  { %v714_v3 = vshrl.u32 %v37_v1, 7 }
   0x6   :  { %16 = vsyncpa [#allocation4], 0  ;;  %v655_v7 = vmov 1.0|1.0   ;;  %v60_v8 = vld [vmem:[%s829_s2] sm:$0xff]  ;;  %vm66_vm6 = vcmask 130048  }
   0x7   :  { %v39_v6 = vadd.s32 8, %v714_v3  ;;  %vm49_vm0 = vcmp.eq.s32.totalorder %v714_v3, %v522_v2  ;;  %vm48_vm1 = vcmp.eq.s32.totalorder %v714_v3, %v521_v4  ;;  %v61_v9 = vld [vmem:[%s829_s2 + $0x8] sm:$0xff]  ;;  %v62_v10 = vld [vmem:[%s829_s2 + $0x10] sm:$0xff]  ;;  %v63_v11 = vld [vmem:[%s829_s2 + $0x18] sm:$0xff]  ;;  %vm220_vm7 = vcmask 392192  }
   0x8   :  { %v64_v12 = vld [vmem:[%s829_s2 + $0x20] sm:$0xff]  ;;  %v65_v13 = vld [vmem:[%s829_s2 + $0x28] sm:$0xff]  ;;  %v198_v16 = vld [vmem:[%s831_s4 + $0x10] sm:$0xff]  ;;  %v656_v17 = vmov 0   ;;  %vm350_vm8 = vcmask 261120  }
   0x9   :  { %vm51_vm2 = vcmp.eq.s32.totalorder %v39_v6, %v522_v2  ;;  %vm50_vm3 = vcmp.eq.s32.totalorder %v39_v6, %v521_v4  ;;  %v192_v14 = vld [vmem:[%s830_s3] sm:$0xff]  ;;  %624 = vset.pattern.permute.xlu0 %v656_v17  ;;  %625 = vset.pattern.permute.xlu1 %v656_v17  ;;  %v197_v18 = vld [vmem:[%s831_s4 + $0x8] sm:$0xff]  ;;  %v199_v19 = vld [vmem:[%s831_s4 + $0x18] sm:$0xff] }
   0xa   :  { %vm596_vm4 = vmpackc.low %vm51_vm2, %vm49_vm0  ;;  %576 = vmatprep.mubr.msk.f32.mxu1 %vm220_vm7, %v192_v14  ;;  %v196_v15 = vld [vmem:[%s831_s4] sm:$0xff]  ;;  %212 = vperm.xlu1 %625, %v198_v16   ;;  %v327_v21 = vld [vmem:[%s833_s6 + $0x8] sm:$0xff] }
   0xb   :  { %597 = vmatprep.subr.msk.bf16.mxu0 %vm596_vm4, %v655_v7  ;;  %vm598_vm5 = vmpackc.low %vm50_vm3, %vm48_vm1  ;;  %202 = vperm.xlu0 %624, %v196_v15   ;;  %v326_v20 = vld [vmem:[%s833_s6] sm:$0xff]  ;;  %v328_v22 = vld [vmem:[%s833_s6 + $0x10] sm:$0xff] }
   0xc   :  { %599 = vmatpush1.bf16.msk.msra.mxu0 %vm598_vm5, %v655_v7  ;;  %v329_v23 = vld [vmem:[%s833_s6 + $0x18] sm:$0xff]  ;;  %v452_v24 = vld [vmem:[%s834_s7] sm:$0xff]  ;;  %v453_v25 = vld [vmem:[%s834_s7 + $0x8] sm:$0xff] }
   0xd   :  { %v454_v26 = vld [vmem:[%s834_s7 + $0x10] sm:$0xff]  ;;  %v455_v27 = vld [vmem:[%s834_s7 + $0x18] sm:$0xff]  ;;  %v489_v28 = vld [vmem:[#allocation2] sm:$0x1] }
   0xe   :  { %217 = vperm.xlu1 %625, %v199_v19   ;;  %v193_v50 = vld [vmem:[%s830_s3 + $0x8] sm:$0xff]  ;;  %v194_v51 = vld [vmem:[%s830_s3 + $0x10] sm:$0xff]  ;;  %v195_v52 = vld [vmem:[%s830_s3 + $0x18] sm:$0xff] }
   0xf   :  { %531 = vmatmul.mubr.msk.f32.vlgmr.msra.gmra.mrb[0].mxu0 %vm66_vm6, %v60_v8  ;;  %207 = vperm.xlu0 %624, %v197_v18   ;;  %v322_v53 = vld [vmem:[%s832_s5] sm:$0xff] }
  0x10   :  { %155 = vmatprep.mubr.f32.mxu0 %v654_v5 }
  0x12   :  { %337 = vperm.xlu1 %625, %v327_v21  }
  0x13   :  { %532 = vmatmul.mubr.msk.f32.gmra.mrb[2].mxu0 %vm66_vm6, %v61_v9  ;;  %332 = vperm.xlu0 %624, %v326_v20   ;;  %v323_v9 = vld [vmem:[%s832_s5 + $0x8] sm:$0xff] }
  0x14   :  { %161 = vmatprep.mubr.f32.mxu0 %v654_v5 }
  0x16   :  { %347 = vperm.xlu1 %625, %v329_v23  }
  0x17   :  { %533 = vmatmul.mubr.msk.f32.gmra.mrb[4].mxu0 %vm66_vm6, %v62_v10  ;;  %342 = vperm.xlu0 %624, %v328_v22   ;;  %v324_v10 = vld [vmem:[%s832_s5 + $0x10] sm:$0xff] }
  0x18   :  { %167 = vmatprep.mubr.f32.mxu0 %v654_v5 }
  0x1a   :  { %463 = vperm.xlu1 %625, %v453_v25  }
  0x1b   :  { %534 = vmatmul.mubr.msk.f32.gmra.mrb[6].mxu0 %vm66_vm6, %v63_v11  ;;  %458 = vperm.xlu0 %624, %v452_v24   ;;  %v325_v11 = vld [vmem:[%s832_s5 + $0x18] sm:$0xff]  ;;  %s657_s5 = smov [#allocation3]  }
  0x1c   :  { %173 = vmatprep.mubr.f32.mxu0 %v654_v5  ;;  %s513_s13 = sshll.u32 %s657_s5, 4  ;;  %s514_s13 = int_to_ptr.vmem [resolvable:$true] %s513_s13 }
  0x1d   :  { %s630_s14 = scalar_lea.vmem %s514_s13, 16  ;;  %s634_s1 = scalar_lea.vmem %s514_s13, 32 }
  0x1e   :  { %473 = vperm.xlu1 %625, %v455_v27   ;;  %p631_p0 = scmp.ne.s32.totalorder %s514_s13, %s630_s14  ;;  %p635_p1 = scmp.lt.s32.totalorder %s514_s13, %s514_s13 }
  0x1f   :  { %535 = vmatmul.mubr.msk.f32.gmra.mrb[8].mxu0 %vm66_vm6, %v64_v12  ;;  %468 = vperm.xlu0 %624, %v454_v26   ;;  %p636_p2 = scmp.lt.s32.totalorder %s634_s1, %s630_s14 }
  0x20   :  { %179 = vmatprep.mubr.f32.mxu0 %v654_v5 }
  0x21   :  { %p637_p3 = por %p636_p2, %p635_p1 }
  0x23   :  { %536 = vmatmul.mubr.msk.f32.gmra.mrb[10].mxu0 %vm66_vm6, %v65_v13  ;;  %492 = vperm.xlu0 %624, %v489_v28   ;;  %p638_p4 = pnand %p637_p3, %p631_p0 }
  0x89   :  { %v213_v55 = vpop.permute.xlu1 %212 }
  0x8a   :  { %v203_v54 = vpop.permute.xlu0 %202 }
  0x8d   :  { %v218_v62 = vpop.permute.xlu1 %217 }
  0x8e   :  { %v208_v56 = vpop.permute.xlu0 %207 }
  0x91   :  { %v338_v13 = vpop.permute.xlu1 %337 }
  0x92   :  { %v333_v12 = vpop.permute.xlu0 %332 }
  0x95   :  { %v348_v15 = vpop.permute.xlu1 %347 }
  0x96   :  { %v343_v14 = vpop.permute.xlu0 %342 }
  0x99   :  { %v464_v22 = vpop.permute.xlu1 %463 }
  0x9a   :  { %v459_v20 = vpop.permute.xlu0 %458 }
  0xe2   :  { %v151_v29 = vpop.f32.mrb[0].mxu0 }
  0xe3   :  { %v153_v30 = vpop.f32.mrb[1].mxu0 }
  0xe4   :  { %v186_v31 = vmul.f32 %v153_v30, %v151_v29 }
  0xe6   :  { %v157_v32 = vpop.f32.mrb[2].mxu0 }
  0xe7   :  { %v159_v33 = vpop.f32.mrb[3].mxu0 }
  0xe8   :  { %v187_v34 = vmul.f32 %v159_v33, %v157_v32  ;;  %v469_v33 = vpop.permute.xlu0 %468 }
  0xea   :  { %v163_v35 = vpop.f32.mrb[4].mxu0  ;;  %v600_v36 = vpack.c.bf16 %v187_v34, %v186_v31 }
  0xeb   :  { %v165_v37 = vpop.f32.mrb[5].mxu0 }
  0xec   :  { %v188_v38 = vmul.f32 %v165_v37, %v163_v35  ;;  %601 = vmatprep.subr.bf16.mxu1 %v600_v36  ;;  %v474_v35 = vpop.permute.xlu1 %473 }
  0xed   :  { %603 = vmatpush3.bf16.msra.mxu1 %v600_v36 }
  0xee   :  { %v169_v39 = vpop.f32.mrb[6].mxu0 }
  0xef   :  { %v171_v40 = vpop.f32.mrb[7].mxu0 }
  0xf0   :  { %v189_v41 = vmul.f32 %v171_v40, %v169_v39 }
  0xf2   :  { %v604_v42 = vpack.c.bf16 %v189_v41, %v188_v38  ;;  %v175_v43 = vpop.f32.mrb[8].mxu0 }
  0xf3   :  { %v177_v44 = vpop.f32.mrb[9].mxu0 }
  0xf4   :  { %v190_v45 = vmul.f32 %v177_v44, %v175_v43  ;;  %605 = vmatprep.subr.bf16.mxu1 %v604_v42  ;;  %v493_v44 = vpop.permute.xlu0 %492 }
  0xf5   :  { %607 = vmatpush3.bf16.msra.mxu1 %v604_v42  ;;  %v497_v42 = vsub.s32 0, %v714_v3 }
  0xf6   :  { %v181_v46 = vpop.f32.mrb[10].mxu0 }
  0xf7   :  { %v183_v47 = vpop.f32.mrb[11].mxu0 }
  0xf8   :  { %v191_v48 = vmul.f32 %v183_v47, %v181_v46  ;;  %v498_v46 = vrot.slane %v493_v44, %v497_v42 }
  0xfa   :  { %v608_v49 = vpack.c.bf16 %v191_v48, %v190_v45 }
  0xfc   :  { %609 = vmatprep.subr.bf16.mxu1 %v608_v49 }
  0xfd   :  { %611 = vmatpush3.bf16.msra.mxu1 %v608_v49 }
 0x100   :  { %577 = vmatmul.mubr.msk.f32.vlgmr.msra.gmra.mrb[0].mxu1 %vm220_vm7, %v193_v50 }
 0x101   :  { %579 = vmatprep.mubr.msk.f32.mxu1 %vm220_vm7, %v194_v51 }
 0x104   :  { %580 = vmatmul.mubr.msk.f32.gmra.mrb[2].mxu1 %vm220_vm7, %v195_v52 }
 0x105   :  { %590 = vmatprep.mubr.msk.f32.mxu1 %vm350_vm8, %v322_v53 }
 0x1d3   :  { %v578_v57 = vpop.f32.mrb[0].mxu1 }
 0x1d4   :  { %v305_v58 = vadd.f32 %v578_v57, %v208_v56  ;;  %v299_v59 = vpop.f32.mrb[1].mxu1 }
 0x1d5   :  { %v300_v60 = vadd.f32 %v299_v59, %v203_v54 }
 0x1d6   :  { %v319_v61 = vmax.f32 %v305_v58, 0.0 }
 0x1d7   :  { %v318_v63 = vmax.f32 %v300_v60, 0.0  ;;  %v581_v0 = vpop.f32.mrb[2].mxu1 }
 0x1d8   :  { %v315_v1 = vadd.f32 %v581_v0, %v218_v62  ;;  %v309_v2 = vpop.f32.mrb[3].mxu1 }
 0x1d9   :  { %v612_v4 = vpack.c.bf16 %v319_v61, %v318_v63  ;;  %v310_v5 = vadd.f32 %v309_v2, %v213_v55 }
 0x1da   :  { %v321_v6 = vmax.f32 %v315_v1, 0.0 }
 0x1db   :  { %v320_v7 = vmax.f32 %v310_v5, 0.0  ;;  %613 = vmatprep.subr.bf16.mxu1 %v612_v4 }
 0x1dc   :  { %615 = vmatpush3.bf16.msra.mxu1 %v612_v4 }
 0x1dd   :  { %v616_v8 = vpack.c.bf16 %v321_v6, %v320_v7 }
 0x1df   :  { %617 = vmatprep.subr.bf16.mxu1 %v616_v8 }
 0x1e0   :  { %619 = vmatpush3.bf16.msra.mxu1 %v616_v8 }
 0x1e3   :  { %591 = vmatmul.mubr.msk.f32.vlgmr.msra.gmra.mrb[4].mxu1 %vm350_vm8, %v323_v9 }
 0x1e4   :  { %593 = vmatprep.mubr.msk.f32.mxu1 %vm350_vm8, %v324_v10 }
 0x1e7   :  { %594 = vmatmul.mubr.msk.f32.gmra.mrb[6].mxu1 %vm350_vm8, %v325_v11 }
 0x2b6   :  { %v592_v16 = vpop.f32.mrb[4].mxu1 }
 0x2b7   :  { %v435_v17 = vadd.f32 %v592_v16, %v338_v13  ;;  %v429_v18 = vpop.f32.mrb[5].mxu1 }
 0x2b8   :  { %v430_v19 = vadd.f32 %v429_v18, %v333_v12 }
 0x2b9   :  { %v449_v21 = vmax.f32 %v435_v17, 0.0 }
 0x2ba   :  { %v448_v23 = vmax.f32 %v430_v19, 0.0  ;;  %v595_v24 = vpop.f32.mrb[6].mxu1 }
 0x2bb   :  { %v477_v25 = vmul.f32 %v464_v22, %v449_v21  ;;  %v445_v26 = vadd.f32 %v595_v24, %v348_v15  ;;  %v439_v27 = vpop.f32.mrb[7].mxu1 }
 0x2bc   :  { %v476_v28 = vmul.f32 %v459_v20, %v448_v23  ;;  %v440_v29 = vadd.f32 %v439_v27, %v343_v14 }
 0x2bd   :  { %v451_v31 = vmax.f32 %v445_v26, 0.0 }
 0x2be   :  { %v480_v30 = vadd.f32 %v477_v25, %v476_v28  ;;  %v450_v32 = vmax.f32 %v440_v29, 0.0 }
 0x2bf   :  { %v479_v36 = vmul.f32 %v474_v35, %v451_v31 }
 0x2c0   :  { %v478_v34 = vmul.f32 %v469_v33, %v450_v32 }
 0x2c2   :  { %v481_v37 = vadd.f32 %v480_v30, %v478_v34 }
 0x2c4   :  { %v482_v38 = vadd.f32 %v481_v37, %v479_v36 }
 0x2c6   :  { %v483_v39 = vrot.slane %v482_v38, 4 }
 0x2c8   :  { %v484_v40 = vadd.f32 %v483_v39, %v482_v38 }
 0x2ca   :  { %v485_v41 = vrot.slane %v484_v40, 2 }
 0x2cc   :  { %v486_v43 = vadd.f32 %v485_v41, %v484_v40 }
 0x2ce   :  { %v487_v45 = vrot.slane %v486_v43, 1 }
 0x2d0   :  { %v488_v47 = vadd.f32 %v487_v45, %v486_v43 }
 0x2d2   :  { %v499_v48 = vadd.f32 %v498_v46, %v488_v47 }
 0x2d4   :  { %v545_v49 = vmul.f32 -1.442695, %v499_v48 }
 0x2d6   :  { %626 = vpow2.f32 %v545_v49 }
 0x2e0   :  { %v627_v50 = vpop.eup %626 }
 0x2e1   :  { %v503_v51 = vadd.f32 1.0, %v627_v50 }
 0x2e3   :  { %628 = vrcp.f32 %v503_v51 }
 0x2ed   :  { %v629_v52 = vpop.eup %628 }
 0x2ee   :  { %506 = vst [vmem:[#allocation3] sm:$0x1] %v629_v52 }
 0x2ef   :  { %641 = shalt.err (!%p638_p4)
}
 0x2f0   :  { %s642_s15 = scalar_lea.hbm %s836_s9, 16 }
 0x2f1   :  { %p643_p5 = scmp.ne.s32.totalorder %s836_s9, %s642_s15  ;;  %p646_p6 = scmp.lt.u32.totalorder %s642_s15, %s836_s9 }
 0x2f3   :  { %p648_p7 = pnand %p646_p6, %p643_p5 }
 0x2f5   :  { %651 = shalt.err (!%p648_p7)
}
 0x2f6   :  { %516 = dma.vmem_to_hbm [thread:$0]  %s514_s13, 16, %s836_s9, [#allocation4]  }
 0x2f7   :  { %652 = dma.done.wait [#allocation4], 16  }
 0x2f8   :  { %653 = vsyncadd [#allocation4], 4294967280 }
 0x2f9   :  { %520 = vsyncpa [#allocation4], 1 }

</bundles_post_ra>
